<compile_context>
chip_gen: v7x
topology: tpu7x:2x2x1
jax: 0.10.0
libtpu: 0.0.40
codegen_flags: <defaults>
</compile_context>

<pallas_src>
import jax
import jax.numpy as jnp
from jax.experimental import pallas as pl
from jax.experimental.pallas import tpu as pltpu


def _pullmask_kernel(w_ref, b_ref, x_ref, o_ref):
    """out[0, c] = sum_cin w[c, cin] * x[0, cin] + b[c]  over a (t, 128) slab.

    w_ref: (C*Cin,) f32 SMEM scalars      b_ref: (C,) f32 SMEM scalars
    x_ref: (1, Cin, t, 128) VMEM          o_ref: (1, C, t, 128) VMEM
    Static-unrolled scalar-splat FMA chain on the VPU; pixels stay dense on
    sublanes and lanes, no cross-sublane traffic, no MXU.
    """
    cin_total = x_ref.shape[1]
    c_total = o_ref.shape[1]
    x = x_ref[0].astype(jnp.float32)                  # (Cin, t, 128) dense slab
    for c in range(c_total):                          # C is tiny -> unrolled
        acc = x[0] * w_ref[c * cin_total] + b_ref[c]
        for cin in range(1, cin_total):               # Cin is tiny -> unrolled
            acc = acc + x[cin] * w_ref[c * cin_total + cin]
        o_ref[0, c, :, :] = acc.astype(o_ref.dtype)


def _choose_pixel_tile(G, t_cap):
    """Pick t (128-pixel blocks per tile). Prefer divisors of G (=> no padding)."""
    t_cap = max(1, t_cap)
    if G <= t_cap:
        return G, G                       # one tile spanning the full block axis
    t = (t_cap // 8) * 8                  # (8,128) rule: t % 8 == 0 or t == G
    while t >= 8:
        if G % t == 0:
            return t, G
        t -= 8
    # No friendly divisor: fixed multiple-of-8 tile + block-axis pad (rare).
    t = max(8, (t_cap // 8) * 8)
    return t, pl.cdiv(G, t) * t


def pull_mask_forward(x_nchw, weight, bias, classes, modalities, *,
                      max_tile_blocks=1024):
    """Forward of _PullMask.

    x_nchw : (N, Cin, H, W) float32
    weight : (C*M, Cin) float32   -- conv2d 1x1 weight with spatial dims squeezed
    bias   : (C*M,)     float32
    returns: (N, C, H, W) float32
    """
    N, Cin, H, W = x_nchw.shape
    C, M = classes, modalities
    assert weight.shape == (C * M, Cin)
    assert bias.shape == (C * M,)
    HW = H * W
    dtype = x_nchw.dtype
    itemsize = jnp.dtype(dtype).itemsize

    # Fold the modality mean into the parameters (exact: mean is linear).
    w_eff = jnp.mean(weight.reshape(C, M, Cin), axis=1)           # (C, Cin)
    b_eff = jnp.mean(bias.reshape(C, M), axis=1)                  # (C,)
    w_flat = w_eff.reshape(C * Cin).astype(jnp.float32)           # SMEM scalars
    b_flat = b_eff.astype(jnp.float32)                            # SMEM scalars

    # Pixel axis -> blocks of 128 lanes.  Pad only if H*W isn't a lane multiple.
    G = pl.cdiv(HW, 128)                  # number of 128-pixel lane blocks

    # VMEM-budgeted tile size (per-generation), double-buffered in+out.
    try:
        vmem_cap = pltpu.get_tpu_info().vmem_capacity_bytes
    except Exception:
        vmem_cap = 64 * 1024 * 1024       # conservative (v7x per-TC VMEM)
    budget = vmem_cap // 8                # 2x double-buffer => <= vmem_cap/4 used
    per_block_bytes = (Cin + C) * 128 * itemsize
    t_cap = min(max_tile_blocks, max(1, budget // (2 * per_block_bytes)))
    if N == 1 and G >= 2:
        t_cap = min(t_cap, G // 2)        # keep >=2 grid steps for v7x megacore
    t, G_pad = _choose_pixel_tile(G, t_cap)

    x3 = x_nchw.reshape(N, Cin, HW)
    pad_px = G_pad * 128 - HW
    if pad_px:
        # Only hit when H*W is not a multiple of 128 (or no divisor tile fits).
        # TODO(synk): handle the ragged tail with an in-kernel masked last tile
        # to also avoid this single pad/slice HBM pass.
        x3 = jnp.pad(x3, ((0, 0), (0, 0), (0, pad_px)))
    x4 = x3.reshape(N, Cin, G_pad, 128)

    grid = (N, G_pad // t)

    out4 = pl.pallas_call(
        _pullmask_kernel,
        out_shape=jax.ShapeDtypeStruct((N, C, G_pad, 128), dtype),
        grid_spec=pltpu.PrefetchScalarGridSpec(
            num_scalar_prefetch=0,
            grid=grid,
            in_specs=[
                pl.BlockSpec(memory_space=pltpu.MemorySpace.SMEM),   # w scalars
                pl.BlockSpec(memory_space=pltpu.MemorySpace.SMEM),   # b scalars
                pl.BlockSpec((1, Cin, t, 128), lambda n, j: (n, 0, j, 0)),
            ],
            out_specs=pl.BlockSpec((1, C, t, 128), lambda n, j: (n, 0, j, 0)),
        ),
        compiler_params=pltpu.CompilerParams(
            dimension_semantics=("parallel", "parallel"),
            vmem_limit_bytes=min(vmem_cap // 2, 64 * 1024 * 1024)),
        cost_estimate=pl.CostEstimate(
            flops=2 * N * HW * Cin * C,
            transcendentals=0,
            bytes_accessed=itemsize * N * HW * (Cin + C)),
    )(w_flat, b_flat, x4)

    out3 = out4.reshape(N, C, G_pad * 128)
    if pad_px:
        out3 = out3[:, :, :HW]
    return out3.reshape(N, C, H, W)


def _reference(x_nchw, weight, bias, classes, modalities):
    N, Cin, H, W = x_nchw.shape
    C, M = classes, modalities
    y = jnp.einsum('nchw,oc->nohw', x_nchw, weight) + bias[None, :, None, None]
    y = y.reshape(N, C, M, H * W).mean(axis=2)
    return y.reshape(N, C, H, W)


if __name__ == "__main__":
    in_channels, classes, modalities = 4, 3, 2
    N, H, W = 2, 16, 16

    key = jax.random.PRNGKey(0)
    kx, kw, kb = jax.random.split(key, 3)

    # deterministic parameter init (PyTorch-like uniform(-k, k), k = 1/sqrt(fan_in))
    k = 1.0 / jnp.sqrt(jnp.float32(in_channels))
    weight = jax.random.uniform(kw, (classes * modalities, in_channels),
                                jnp.float32, minval=-k, maxval=k)
    bias = jax.random.uniform(kb, (classes * modalities,),
                              jnp.float32, minval=-k, maxval=k)

    x = jax.random.normal(kx, (N, in_channels, H, W), jnp.float32)

    out = pull_mask_forward(x, weight, bias, classes, modalities)
    out = jax.block_until_ready(out)

    ref = _reference(x, weight, bias, classes, modalities)
    assert out.shape == (N, classes, H, W)
    assert jnp.allclose(out, ref, rtol=1e-5, atol=1e-5)

    print("KERNEL_OK")
</pallas_src>

<mosaic_0001>
module attributes {stable_mosaic.version = 11 : i64} {
  func.func @_pullmask_kernel(%arg0: i32, %arg1: i32, %arg2: memref<12xf32, #tpu.memory_space<smem>>, %arg3: memref<3xf32, #tpu.memory_space<smem>>, %arg4: memref<1x4x2x128xf32, #tpu.memory_space<vmem>>, %arg5: memref<1x3x2x128xf32, #tpu.memory_space<vmem>>) attributes {dimension_semantics = [#tpu.dimension_semantics<parallel>, #tpu.dimension_semantics<parallel>], iteration_bounds = array<i64: 2, 1>, scalar_prefetch = 0 : i64, scratch_operands = 0 : i64, tpu.core_type = #tpu.core_type<tc>, window_params = [{transform_indices = @transform_0, window_bounds = array<i64: 12>}, {transform_indices = @transform_1, window_bounds = array<i64: 3>}, {transform_indices = @transform_2, window_bounds = array<i64: 1, 4, 2, 128>}, {transform_indices = @transform_3, window_bounds = array<i64: 1, 3, 2, 128>}]} {
    %c0 = arith.constant 0 : index
    %c0_0 = arith.constant 0 : index
    %c0_1 = arith.constant 0 : index
    %c0_2 = arith.constant 0 : index
    %0 = vector.load %arg4[%c0, %c0_0, %c0_1, %c0_2] : memref<1x4x2x128xf32, #tpu.memory_space<vmem>>, vector<1x4x2x128xf32>
    %1 = vector.shape_cast %0 : vector<1x4x2x128xf32> to vector<4x2x128xf32>
    %2 = vector.extract_strided_slice %1 {offsets = [0, 0, 0], sizes = [1, 2, 128], strides = [1, 1, 1]} : vector<4x2x128xf32> to vector<1x2x128xf32>
    %3 = vector.shape_cast %2 : vector<1x2x128xf32> to vector<2x128xf32>
    %c0_3 = arith.constant 0 : index
    %4 = memref.load %arg2[%c0_3] : memref<12xf32, #tpu.memory_space<smem>>
    %5 = vector.broadcast %4 : f32 to vector<2x128xf32>
    %6 = arith.mulf %3, %5 : vector<2x128xf32>
    %c0_4 = arith.constant 0 : index
    %7 = memref.load %arg3[%c0_4] : memref<3xf32, #tpu.memory_space<smem>>
    %8 = vector.broadcast %7 : f32 to vector<2x128xf32>
    %9 = arith.addf %6, %8 : vector<2x128xf32>
    %10 = vector.extract_strided_slice %1 {offsets = [1, 0, 0], sizes = [1, 2, 128], strides = [1, 1, 1]} : vector<4x2x128xf32> to vector<1x2x128xf32>
    %11 = vector.shape_cast %10 : vector<1x2x128xf32> to vector<2x128xf32>
    %c1 = arith.constant 1 : index
    %12 = memref.load %arg2[%c1] : memref<12xf32, #tpu.memory_space<smem>>
    %13 = vector.broadcast %12 : f32 to vector<2x128xf32>
    %14 = arith.mulf %11, %13 : vector<2x128xf32>
    %15 = arith.addf %9, %14 : vector<2x128xf32>
    %16 = vector.extract_strided_slice %1 {offsets = [2, 0, 0], sizes = [1, 2, 128], strides = [1, 1, 1]} : vector<4x2x128xf32> to vector<1x2x128xf32>
    %17 = vector.shape_cast %16 : vector<1x2x128xf32> to vector<2x128xf32>
    %c2 = arith.constant 2 : index
    %18 = memref.load %arg2[%c2] : memref<12xf32, #tpu.memory_space<smem>>
    %19 = vector.broadcast %18 : f32 to vector<2x128xf32>
    %20 = arith.mulf %17, %19 : vector<2x128xf32>
    %21 = arith.addf %15, %20 : vector<2x128xf32>
    %22 = vector.extract_strided_slice %1 {offsets = [3, 0, 0], sizes = [1, 2, 128], strides = [1, 1, 1]} : vector<4x2x128xf32> to vector<1x2x128xf32>
    %23 = vector.shape_cast %22 : vector<1x2x128xf32> to vector<2x128xf32>
    %c3 = arith.constant 3 : index
    %24 = memref.load %arg2[%c3] : memref<12xf32, #tpu.memory_space<smem>>
    %25 = vector.broadcast %24 : f32 to vector<2x128xf32>
    %26 = arith.mulf %23, %25 : vector<2x128xf32>
    %27 = arith.addf %21, %26 : vector<2x128xf32>
    %c0_5 = arith.constant 0 : index
    %c0_6 = arith.constant 0 : index
    %c0_7 = arith.constant 0 : index
    %c0_8 = arith.constant 0 : index
    %28 = vector.load %arg5[%c0_5, %c0_6, %c0_7, %c0_8] : memref<1x3x2x128xf32, #tpu.memory_space<vmem>>, vector<1x1x2x128xf32>
    %29 = vector.shape_cast %28 : vector<1x1x2x128xf32> to vector<2x128xf32>
    %30 = vector.shape_cast %27 : vector<2x128xf32> to vector<1x1x2x128xf32>
    tpu.vector_store %arg5[%c0_5, %c0_6, %c0_7, %c0_8], %30 {strides = array<i32>} : memref<1x3x2x128xf32, #tpu.memory_space<vmem>>, vector<1x1x2x128xf32>,
    %31 = vector.extract_strided_slice %1 {offsets = [0, 0, 0], sizes = [1, 2, 128], strides = [1, 1, 1]} : vector<4x2x128xf32> to vector<1x2x128xf32>
    %32 = vector.shape_cast %31 : vector<1x2x128xf32> to vector<2x128xf32>
    %c4 = arith.constant 4 : index
    %33 = memref.load %arg2[%c4] : memref<12xf32, #tpu.memory_space<smem>>
    %34 = vector.broadcast %33 : f32 to vector<2x128xf32>
    %35 = arith.mulf %32, %34 : vector<2x128xf32>
    %c1_9 = arith.constant 1 : index
    %36 = memref.load %arg3[%c1_9] : memref<3xf32, #tpu.memory_space<smem>>
    %37 = vector.broadcast %36 : f32 to vector<2x128xf32>
    %38 = arith.addf %35, %37 : vector<2x128xf32>
    %39 = vector.extract_strided_slice %1 {offsets = [1, 0, 0], sizes = [1, 2, 128], strides = [1, 1, 1]} : vector<4x2x128xf32> to vector<1x2x128xf32>
    %40 = vector.shape_cast %39 : vector<1x2x128xf32> to vector<2x128xf32>
    %c5 = arith.constant 5 : index
    %41 = memref.load %arg2[%c5] : memref<12xf32, #tpu.memory_space<smem>>
    %42 = vector.broadcast %41 : f32 to vector<2x128xf32>
    %43 = arith.mulf %40, %42 : vector<2x128xf32>
    %44 = arith.addf %38, %43 : vector<2x128xf32>
    %45 = vector.extract_strided_slice %1 {offsets = [2, 0, 0], sizes = [1, 2, 128], strides = [1, 1, 1]} : vector<4x2x128xf32> to vector<1x2x128xf32>
    %46 = vector.shape_cast %45 : vector<1x2x128xf32> to vector<2x128xf32>
    %c6 = arith.constant 6 : index
    %47 = memref.load %arg2[%c6] : memref<12xf32, #tpu.memory_space<smem>>
    %48 = vector.broadcast %47 : f32 to vector<2x128xf32>
    %49 = arith.mulf %46, %48 : vector<2x128xf32>
    %50 = arith.addf %44, %49 : vector<2x128xf32>
    %51 = vector.extract_strided_slice %1 {offsets = [3, 0, 0], sizes = [1, 2, 128], strides = [1, 1, 1]} : vector<4x2x128xf32> to vector<1x2x128xf32>
    %52 = vector.shape_cast %51 : vector<1x2x128xf32> to vector<2x128xf32>
    %c7 = arith.constant 7 : index
    %53 = memref.load %arg2[%c7] : memref<12xf32, #tpu.memory_space<smem>>
    %54 = vector.broadcast %53 : f32 to vector<2x128xf32>
    %55 = arith.mulf %52, %54 : vector<2x128xf32>
    %56 = arith.addf %50, %55 : vector<2x128xf32>
    %c0_10 = arith.constant 0 : index
    %c1_11 = arith.constant 1 : index
    %c0_12 = arith.constant 0 : index
    %c0_13 = arith.constant 0 : index
    %57 = vector.load %arg5[%c0_10, %c1_11, %c0_12, %c0_13] : memref<1x3x2x128xf32, #tpu.memory_space<vmem>>, vector<1x1x2x128xf32>
    %58 = vector.shape_cast %57 : vector<1x1x2x128xf32> to vector<2x128xf32>
    %59 = vector.shape_cast %56 : vector<2x128xf32> to vector<1x1x2x128xf32>
    tpu.vector_store %arg5[%c0_10, %c1_11, %c0_12, %c0_13], %59 {strides = array<i32>} : memref<1x3x2x128xf32, #tpu.memory_space<vmem>>, vector<1x1x2x128xf32>,
    %60 = vector.extract_strided_slice %1 {offsets = [0, 0, 0], sizes = [1, 2, 128], strides = [1, 1, 1]} : vector<4x2x128xf32> to vector<1x2x128xf32>
    %61 = vector.shape_cast %60 : vector<1x2x128xf32> to vector<2x128xf32>
    %c8 = arith.constant 8 : index
    %62 = memref.load %arg2[%c8] : memref<12xf32, #tpu.memory_space<smem>>
    %63 = vector.broadcast %62 : f32 to vector<2x128xf32>
    %64 = arith.mulf %61, %63 : vector<2x128xf32>
    %c2_14 = arith.constant 2 : index
    %65 = memref.load %arg3[%c2_14] : memref<3xf32, #tpu.memory_space<smem>>
    %66 = vector.broadcast %65 : f32 to vector<2x128xf32>
    %67 = arith.addf %64, %66 : vector<2x128xf32>
    %68 = vector.extract_strided_slice %1 {offsets = [1, 0, 0], sizes = [1, 2, 128], strides = [1, 1, 1]} : vector<4x2x128xf32> to vector<1x2x128xf32>
    %69 = vector.shape_cast %68 : vector<1x2x128xf32> to vector<2x128xf32>
    %c9 = arith.constant 9 : index
    %70 = memref.load %arg2[%c9] : memref<12xf32, #tpu.memory_space<smem>>
    %71 = vector.broadcast %70 : f32 to vector<2x128xf32>
    %72 = arith.mulf %69, %71 : vector<2x128xf32>
    %73 = arith.addf %67, %72 : vector<2x128xf32>
    %74 = vector.extract_strided_slice %1 {offsets = [2, 0, 0], sizes = [1, 2, 128], strides = [1, 1, 1]} : vector<4x2x128xf32> to vector<1x2x128xf32>
    %75 = vector.shape_cast %74 : vector<1x2x128xf32> to vector<2x128xf32>
    %c10 = arith.constant 10 : index
    %76 = memref.load %arg2[%c10] : memref<12xf32, #tpu.memory_space<smem>>
    %77 = vector.broadcast %76 : f32 to vector<2x128xf32>
    %78 = arith.mulf %75, %77 : vector<2x128xf32>
    %79 = arith.addf %73, %78 : vector<2x128xf32>
    %80 = vector.extract_strided_slice %1 {offsets = [3, 0, 0], sizes = [1, 2, 128], strides = [1, 1, 1]} : vector<4x2x128xf32> to vector<1x2x128xf32>
    %81 = vector.shape_cast %80 : vector<1x2x128xf32> to vector<2x128xf32>
    %c11 = arith.constant 11 : index
    %82 = memref.load %arg2[%c11] : memref<12xf32, #tpu.memory_space<smem>>
    %83 = vector.broadcast %82 : f32 to vector<2x128xf32>
    %84 = arith.mulf %81, %83 : vector<2x128xf32>
    %85 = arith.addf %79, %84 : vector<2x128xf32>
    %c0_15 = arith.constant 0 : index
    %c2_16 = arith.constant 2 : index
    %c0_17 = arith.constant 0 : index
    %c0_18 = arith.constant 0 : index
    %86 = vector.load %arg5[%c0_15, %c2_16, %c0_17, %c0_18] : memref<1x3x2x128xf32, #tpu.memory_space<vmem>>, vector<1x1x2x128xf32>
    %87 = vector.shape_cast %86 : vector<1x1x2x128xf32> to vector<2x128xf32>
    %88 = vector.shape_cast %85 : vector<2x128xf32> to vector<1x1x2x128xf32>
    tpu.vector_store %arg5[%c0_15, %c2_16, %c0_17, %c0_18], %88 {strides = array<i32>} : memref<1x3x2x128xf32, #tpu.memory_space<vmem>>, vector<1x1x2x128xf32>,
    return
  }
  func.func @transform_0(%arg0: i32, %arg1: i32) -> i32 {
    %c0_i32 = arith.constant 0 : i32
    %c0_i32_0 = arith.constant 0 : i32
    return %c0_i32 : i32
  }
  func.func @transform_1(%arg0: i32, %arg1: i32) -> i32 {
    %c0_i32 = arith.constant 0 : i32
    %c0_i32_0 = arith.constant 0 : i32
    return %c0_i32 : i32
  }
  func.func @transform_2(%arg0: i32, %arg1: i32) -> (i32, i32, i32, i32) {
    %c0_i32 = arith.constant 0 : i32
    %c0_i32_0 = arith.constant 0 : i32
    %c0_i32_1 = arith.constant 0 : i32
    return %arg0, %c0_i32, %arg1, %c0_i32_0 : i32, i32, i32, i32
  }
  func.func @transform_3(%arg0: i32, %arg1: i32) -> (i32, i32, i32, i32) {
    %c0_i32 = arith.constant 0 : i32
    %c0_i32_0 = arith.constant 0 : i32
    %c0_i32_1 = arith.constant 0 : i32
    return %arg0, %c0_i32, %arg1, %c0_i32_0 : i32, i32, i32, i32
  }
}

</mosaic_0001>

<bundles_post_ra>
// kernel: tpu_custom_call.1
= control target key start
LH: loop header
LB: loop body
LE: loop exit
PB: predicated region body
PF: predicated region fallthrough
CT: control target
= control target key end

     0   :  { %8 = vsyncpa [#allocation5], 0  ;;  %s955_s0 = inlined_call_operand.hbm [shape: f32[12], index: 0, kind: input, shape index: {}]   ;;  %s956_s1 = inlined_call_operand.vmem [shape: f32[3], index: 1, kind: input, shape index: {}]   ;;  %s957_s2 = inlined_call_operand.hbm [shape: f32[2,4,2,128], index: 2, kind: input, shape index: {}]   ;;  %s958_s3 = inlined_call_operand.hbm [shape: f32[2,3,2,128], index: 3, kind: output, shape index: {}]  }
   0x1   :  { %9 = vsyncpa [#allocation6], 0 }
   0x2   :  { %10 = vsyncpa [#allocation3], 0 }
   0x3   :  { %12 = vsyncpa [#allocation3 + $0x1], 0 }
   0x4   :  { %13 = vsyncpa [#allocation4], 0 }
   0x5   :  { %15 = vsyncpa [#allocation4 + $0x1], 0  ;;  %s717_s12 = smov 0   ;;  %s719_s13 = smov 0  }
   0x6   :  { %s721_s14 = smov 0   ;;  %s723_s15 = smov 0  }
   0x7   :  { %s725_s16 = smov 0   ;;  %s727_s17 = smov 0  }
   0x8 LB: > { %s418_s18 = sadd.s32 4294967295, %s687_s17   ;;  %s419_s19 = sadd.s32 4294967294, %s687_s17   ;;  %s687_s17 = sphi %s727_s17, %s21_s17   ;;  %s683_s16 = sphi %s725_s16, %s979_s16   ;;  %s679_s15 = sphi %s723_s15, %s978_s15   ;;  %s675_s14 = sphi %s721_s14, %s977_s14   ;;  %s671_s13 = sphi %s719_s13, %s976_s13   ;;  %s667_s12 = sphi %s717_s12, %s975_s12  }
   0x9   : > { %s84_s20 = sadd.s32 1, %s675_s14  ;;  %p91_p0 = scmp.ne.s32.totalorder %s675_s14, %s671_s13 }
   0xa   : > { %p92_p1 = scmp.eq.s32.totalorder %s687_s17, 0  ;;  %p97_p2 = scmp.ne.s32.totalorder %s671_s13, %s667_s12 }
   0xb   : > { %p755_p3 = scmp.eq.s32.totalorder %s418_s18, 0  ;;  %p123_p4 = scmp.eq.s32.totalorder %s418_s18, 1 }
   0xc   : > { %p93_p5 = por %p92_p1, %p91_p0  ;;  %p129_p6 = scmp.eq.s32.totalorder %s419_s19, 1 }
   0xd   : > { %s963_s21 = scalar_select %p755_p3, 1, 0 }
   0xe   : > { %p761_p7 = por %p755_p3, %p97_p2  ;;  %p765_p8 = por %p123_p4, %p91_p0 }
   0xf   : > { %p769_p9 = por %p129_p6, %p97_p2  ;;  %p420_p10 = scmp.ge.s32.totalorder %s687_s17, 1 }
  0x10   : > { %s964_s22 = scalar_select %p761_p7, 1, 0 }
  0x11   : > { %s965_s23 = scalar_select %p765_p8, 1, 0 }
  0x12   : > { %s966_s24 = scalar_select %p769_p9, 1, 0 }
  0x13   : > { %p136_p11 = scmp.lt.s32.totalorder %s687_s17, 3  ;;  %p481_p1 = scmp.lt.s32.totalorder %s687_s17, 2 }
  0x14   : > { %s158_s28 = sshll.u32 %s956_s1, 4  ;;  %s169_s4 = sand.u32 1, %s675_s14   ;;  %s159_s28 = int_to_ptr.vmem [resolvable:$true] %s158_s28 }
  0x15   : > { %p776_p13 = pnand %p420_p10, %p136_p11  ;;  %p786_p4 = pnand %p481_p1, %p93_p5 }
  0x16   : > { %s33_s5 = sadd.s32 1, %s683_s16  ;;  %s539_s8 = scalar_lea.hbm %s955_s0, 16 }
  0x17   : > { %p464_p0 = pneg %p776_p13  ;;  %p540_p5 = scmp.ne.s32.totalorder %s955_s0, %s539_s8 }
  0x18   : > { %p546_p1 = scmp.lt.u32.totalorder %s539_s8, %s955_s0 }
  0x19   : > { %p792_p2 = pnand %p464_p0, %p755_p3 }
  0x1b   : > { %p541_p6 = pneg %p792_p2 }
  0x1d   : > { %p542_p10 = pnand %p541_p6, %p540_p5 }
  0x1f   : > { %p543_p11 = pneg %p542_p10 }
  0x21   : > { %p548_p0 = pnand %p546_p1, %p543_p11 }
  0x23   : > { %551 = shalt.err (!%p548_p0)
}
  0x24   : > { %s689_s19 = smov [#allocation2]   ;;  %s552_s6 = scalar_lea.vmem %s159_s28, 16 }
  0x25   : > { %467 = dma.hbm_to_smem (!%p792_p2), %s955_s0, 16, %s689_s19, [#allocation5]  }
  0x26   : > { %p553_p12 = scmp.ne.s32.totalorder %s159_s28, %s552_s6  ;;  %p560_p7 = scmp.lt.s32.totalorder %s159_s28, %s159_s28 }
  0x27   : > { %p561_p5 = scmp.lt.s32.totalorder %s552_s6, %s552_s6 }
  0x28   : > { %p555_p9 = pnand %p553_p12, %p541_p6 }
  0x29   : > { %p562_p10 = por %p561_p5, %p560_p7 }
  0x2a   : > { %p556_p8 = pneg %p555_p9 }
  0x2c   : > { %p563_p3 = pnand %p562_p10, %p556_p8 }
  0x2e   : > { %566 = shalt.err (!%p563_p3)
}
  0x2f   : > { %s690_s7 = smov [#allocation7]   ;;  %p35_p11 = scmp.ge.s32.totalorder %s33_s5, 2 }
  0x30   : > { %470 = dma.vmem_to_smem (!%p792_p2), %s159_s28, 16, %s690_s7, [#allocation6]  }
  0x31   : > { %s424_s8 = sshll.u32 %s169_s4, 3  ;;  %s449_s9 = sshll.u32 %s683_s16, 7 }
  0x32   : > { %s981_s5 = smov (%p35_p11, %s33_s5), 0  ;;  %s824_s30 = scalar_lea.hbm %s957_s2, %s449_s9 }
  0x33   : > { %s79_s18 = ssub.s32 %s683_s16, %s981_s5  ;;  %s173_s19 = scalar_lea.vmem [#allocation8], %s424_s8 }
  0x34   : > { %s181_s28 = sshll.u32 %s173_s19, 4  ;;  %p82_p3 = scmp.eq.s32.totalorder %s79_s18, 0  ;;  %s828_s28 = int_to_ptr.vmem [resolvable:$true] %s181_s28 }
  0x35   : > { %s837_s27 = scalar_lea.sflag [#allocation3], %s169_s4  ;;  %s567_s6 = scalar_lea.hbm %s824_s30, 128 }
  0x36   : > { %s833_s26 = scalar_select %p82_p3, %s675_s14, %s84_s20  }
  0x37   : > { %p568_p7 = scmp.ne.s32.totalorder %s824_s30, %s567_s6  ;;  %p569_p8 = pneg %p786_p4 }
  0x38   : > { %s572_s9 = scalar_lea.hbm %s957_s2, 256  ;;  %p573_p2 = scmp.lt.u32.totalorder %s824_s30, %s957_s2 }
  0x39   : > { %p570_p9 = pnand %p569_p8, %p568_p7  ;;  %p574_p6 = scmp.lt.u32.totalorder %s572_s9, %s567_s6 }
  0x3a   : > { %p576_p0 = scmp.lt.u32.totalorder %s567_s6, %s824_s30 }
  0x3b   : > { %p571_p12 = pneg %p570_p9  ;;  %p575_p1 = por %p574_p6, %p573_p2 }
  0x3d   : > { %p577_p5 = por %p576_p0, %p575_p1 }
  0x3f   : > { %p578_p10 = pnand %p577_p5, %p571_p12 }
  0x41   : > { %581 = shalt.err (!%p578_p10)
}
  0x42   : > { %s582_s20 = scalar_lea.vmem %s828_s28, 128  ;;  %s691_s4 = smov [#allocation8]  }
  0x43   : > { %p583_p11 = scmp.ne.s32.totalorder %s828_s28, %s582_s20  ;;  %s587_s18 = sshll.u32 %s691_s4, 4  ;;  %s588_s18 = int_to_ptr.vmem [resolvable:$false] %s587_s18 }
  0x44   : > { %s589_s19 = scalar_lea.vmem %s588_s18, 256  ;;  %p590_p9 = scmp.lt.s32.totalorder %s828_s28, %s588_s18 }
  0x45   : > { %p585_p3 = pnand %p583_p11, %p569_p8  ;;  %p591_p2 = scmp.lt.s32.totalorder %s589_s19, %s582_s20 }
  0x47   : > { %p586_p7 = pneg %p585_p3  ;;  %p592_p6 = por %p591_p2, %p590_p9 }
  0x49   : > { %p593_p1 = pnand %p592_p6, %p586_p7 }
  0x4b   : > { %596 = shalt.err (!%p593_p1)
}
  0x4c   : > { %s692_s6 = smov 32   ;;  %s693_s7 = smov 2  }
  0x4d   : > { %474 = dma.hbm_to_vmem [thread:$0]  (!%p786_p4), %s824_s30, 128, %s828_s28, %s837_s27, %s692_s6, %s692_s6, %s693_s7  }
  0x4e   : > { %193 = sbr.rel (%p776_p13) target bundleno = 132 (0x84), region = 32  ;;  %p970_p8 = scmp.ne.s32.totalorder (!%p776_p13), %s963_s21, 0 }
  0x55   : > { %650 = dma.done.wait (%p970_p8), [#allocation5], 16  }
  0x56   : > { %652 = vsyncadd (%p970_p8), [#allocation5], 4294967280 }
  0x57   : > { %654 = dma.done.wait (%p970_p8), [#allocation6], 16  }
  0x58   : > { %656 = vsyncadd (%p970_p8), [#allocation6], 4294967280  ;;  %s876_s8 = sand.u32 1, %s671_s13   ;;  %p971_p13 = scmp.ne.s32.totalorder %s964_s22, 0 }
  0x59   : > { %s430_s25 = sshll.u32 %s876_s8, 3  ;;  %s204_s29 = scalar_lea.sflag [#allocation3], %s876_s8 }
  0x5a   : > { %s207_s30 = scalar_lea.vmem [#allocation8], %s430_s25 }
  0x5b   : > { %658 = dma.done.wait (%p971_p13), %s204_s29, 128  }
  0x5c   : > { %660 = vsyncadd (%p971_p13), %s204_s29, 4294967168 }
  0x5d   : > { %212 = sfence }
  0x5e   : > { %s235_s28 = sld [smem:[#allocation2]]  ;;  %s431_s9 = sld [smem:[#allocation2 + $0x1]]  ;;  %v231_v0 = vld [vmem:[%s207_s30] sm:$0x3]  ;;  %v232_v1 = vld [vmem:[%s207_s30 + $0x2] sm:$0x3] }
  0x5f   : > { %s238_s27 = sld [smem:[#allocation7]]  ;;  %s432_s21 = sld [smem:[#allocation2 + $0x2]]  ;;  %v233_v2 = vld [vmem:[%s207_s30 + $0x4] sm:$0x3]  ;;  %v234_v4 = vld [vmem:[%s207_s30 + $0x6] sm:$0x3] }
  0x60   : > { %s433_s10 = sld [smem:[#allocation2 + $0x3]]  ;;  %s434_s11 = sld [smem:[#allocation2 + $0x4]] }
  0x61   : > { %s884_s20 = sld [smem:[#allocation7 + $0x1]]  ;;  %s436_s4 = sld [smem:[#allocation2 + $0x5]] }
  0x62   : > { %s437_s18 = sld [smem:[#allocation2 + $0x6]]  ;;  %s438_s19 = sld [smem:[#allocation2 + $0x7]] }
  0x63   : > { %s886_s22 = sld [smem:[#allocation2 + $0x8]]  ;;  %s888_s6 = sld [smem:[#allocation7 + $0x2]] }
  0x64   : > { %v236_v3 = vstv %s235_s28  ;;  %v242_v7 = vstv %s431_s9  ;;  %s442_s7 = sld [smem:[#allocation2 + $0x9]]  ;;  %s890_s25 = sld [smem:[#allocation2 + $0xa]] }
  0x65   : > { %v237_v5 = vmul.f32 %v236_v3, %v231_v0  ;;  %v239_v6 = vstv %s238_s27  ;;  %v246_v8 = vstv %s432_s21  ;;  %v243_v10 = vmul.f32 %v242_v7, %v232_v1  ;;  %s892_s29 = sld [smem:[#allocation2 + $0xb]]  ;;  %s450_s30 = smul.u32 6, %s876_s8 }
  0x66   : > { %v247_v11 = vmul.f32 %v246_v8, %v233_v2  ;;  %v250_v12 = vstv %s433_s10  ;;  %v255_v14 = vstv %s434_s11  ;;  %s451_s9 = smul.u32 96, %s679_s15  ;;  %p972_p12 = scmp.ne.s32.totalorder %s965_s23, 0 }
  0x67   : > { %v240_v9 = vadd.f32 %v239_v6, %v237_v5  ;;  %v251_v13 = vmul.f32 %v250_v12, %v234_v4  ;;  %v256_v16 = vmul.f32 %v255_v14, %v231_v0  ;;  %v258_v17 = vstv %s884_s20  ;;  %s230_s28 = scalar_lea.vmem [#allocation9], %s450_s30  ;;  %s295_s20 = scalar_lea.sflag [#allocation4], %s876_s8 }
  0x68   : > { %v261_v18 = vstv %s436_s4  ;;  %v265_v20 = vstv %s437_s18  ;;  %v269_v21 = vstv %s438_s19  ;;  %s309_s27 = sshll.u32 %s230_s28, 4  ;;  %s906_s11 = scalar_lea.hbm %s958_s3, %s451_s9  ;;  %s901_s27 = int_to_ptr.vmem [resolvable:$true] %s309_s27 }
  0x69   : > { %v244_v15 = vadd.f32 %v243_v10, %v240_v9  ;;  %v262_v19 = vmul.f32 %v261_v18, %v232_v1  ;;  %v259_v23 = vadd.f32 %v258_v17, %v256_v16  ;;  %v266_v24 = vmul.f32 %v265_v20, %v233_v2  ;;  %s597_s4 = scalar_lea.vmem %s901_s27, 96  ;;  %s694_s15 = smov [#allocation9]  }
  0x6a   : > { %v270_v25 = vmul.f32 %v269_v21, %v234_v4  ;;  %v275_v26 = vstv %s886_s22  ;;  %v278_v27 = vstv %s888_s6  ;;  %v281_v28 = vstv %s442_s7  ;;  %p598_p4 = scmp.ne.s32.totalorder %s901_s27, %s597_s4  ;;  %s601_s18 = sshll.u32 %s694_s15, 4  ;;  %s602_s18 = int_to_ptr.vmem [resolvable:$false] %s601_s18 }
  0x6b   : > { %v248_v22 = vadd.f32 %v247_v11, %v244_v15  ;;  %v285_v29 = vstv %s890_s25  ;;  %v263_v31 = vadd.f32 %v262_v19, %v259_v23  ;;  %v276_v32 = vmul.f32 %v275_v26, %v231_v0  ;;  %s603_s19 = scalar_lea.vmem %s602_s18, 192  ;;  %p604_p10 = scmp.lt.s32.totalorder %s901_s27, %s602_s18 }
  0x6c   : > { %v282_v33 = vmul.f32 %v281_v28, %v232_v1  ;;  %v289_v34 = vstv %s892_s29  ;;  %v286_v37 = vmul.f32 %v285_v29, %v233_v2  ;;  %p599_p0 = pnand %p598_p4, %p972_p12  ;;  %p605_p11 = scmp.lt.s32.totalorder %s603_s19, %s597_s4 }
  0x6d   : > { %v252_v30 = vadd.f32 %v251_v13, %v248_v22  ;;  %v267_v35 = vadd.f32 %v266_v24, %v263_v31  ;;  %v279_v36 = vadd.f32 %v278_v27, %v276_v32  ;;  %v290_v40 = vmul.f32 %v289_v34, %v234_v4 }
  0x6e   : > { %p600_p5 = pneg %p599_p0  ;;  %p606_p3 = por %p605_p11, %p604_p10 }
  0x6f   : > { %253 = vst [vmem:[%s230_s28] sm:$0x3] %v252_v30  ;;  %v271_v38 = vadd.f32 %v270_v25, %v267_v35  ;;  %v283_v39 = vadd.f32 %v282_v33, %v279_v36 }
  0x70   : > { %p607_p7 = pnand %p606_p3, %p600_p5 }
  0x71   : > { %439 = vst [vmem:[%s230_s28 + $0x2] sm:$0x3] %v271_v38  ;;  %v287_v41 = vadd.f32 %v286_v37, %v283_v39 }
  0x73   : > { %v291_v42 = vadd.f32 %v290_v40, %v287_v41 }
  0x75   : > { %445 = vst [vmem:[%s230_s28 + $0x4] sm:$0x3] %v291_v42 }
  0x76   : > { %610 = shalt.err (!%p607_p7)
}
  0x77   : > { %s611_s22 = scalar_lea.hbm %s906_s11, 96  ;;  %s615_s25 = scalar_lea.hbm %s958_s3, 192 }
  0x78   : > { %p612_p9 = scmp.ne.s32.totalorder %s906_s11, %s611_s22  ;;  %p616_p1 = scmp.lt.u32.totalorder %s906_s11, %s958_s3 }
  0x79   : > { %p617_p8 = scmp.lt.u32.totalorder %s615_s25, %s611_s22  ;;  %p619_p4 = scmp.lt.u32.totalorder %s611_s22, %s906_s11 }
  0x7a   : > { %p613_p2 = pnand %p612_p9, %p972_p12 }
  0x7b   : > { %p618_p13 = por %p617_p8, %p616_p1 }
  0x7c   : > { %p614_p6 = pneg %p613_p2 }
  0x7d   : > { %p620_p0 = por %p619_p4, %p618_p13 }
  0x7f   : > { %p621_p5 = pnand %p620_p0, %p614_p6 }
  0x81   : > { %624 = shalt.err (!%p621_p5)
}
  0x82   : > { %s695_s28 = smov 32   ;;  %s696_s9 = smov 2  }
  0x83   : > { %462 = dma.vmem_to_hbm [thread:$0]  (%p972_p12), %s901_s27, 96, %s906_s11, %s295_s20, %s695_s28, %s695_s28, %s696_s9  }
  0x84 PF: > { %s324_s21 = sand.u32 1, %s667_s12   ;;  %p973_p10 = scmp.ne.s32.totalorder %s966_s24, 0 }
  0x85   : > { %p974_p11 = scmp.ge.s32.totalorder %s687_s17, 2  ;;  %s325_s10 = scalar_lea.sflag [#allocation4], %s324_s21 }
  0x87   : > { %p476_p3 = pnand %p974_p11, %p973_p10 }
  0x89   : > { %662 = dma.done.wait (!%p476_p3), %s325_s10, 96  }
  0x8a   : > { %664 = vsyncadd (!%p476_p3), %s325_s10, 4294967200  ;;  %s21_s17 = sadd.s32 1, %s687_s17   ;;  %s975_s12 = smov %s671_s13 }
  0x8b   : > { %p18_p7 = scmp.ge.s32.totalorder %s21_s17, 4   ;;  %s976_s13 = smov %s675_s14 }
  0x8c   : > { %s977_s14 = smov %s833_s26  ;;  %s978_s15 = smov %s683_s16 }
  0x8d   : > { %s979_s16 = smov %s981_s5  ;;  %20 = sbr.rel (!%p18_p7) target bundleno = 8 (0x8), region = 89 }
  0x94   :  { %330 = vsyncpa [#allocation3], 1 }
  0x95   :  { %332 = vsyncpa [#allocation3 + $0x1], 1 }
  0x96   :  { %333 = vsyncpa [#allocation4], 1 }
  0x97   :  { %335 = vsyncpa [#allocation4 + $0x1], 1 }
  0x98   :  { %336 = vsyncpa [#allocation5], 1 }
  0x99   :  { %338 = vsyncpa [#allocation5 + $0x1], 1 }
  0x9a   :  { %339 = vsyncpa [#allocation6], 1 }
  0x9b   :  { %341 = vsyncpa [#allocation6 + $0x1], 1 }

</bundles_post_ra>
